<compile_context>
chip_gen: v7x
topology: tpu7x:2x2x1
jax: 0.10.0
libtpu: 0.0.40
codegen_flags: <defaults>
</compile_context>

<pallas_src>
import functools

import jax
import jax.numpy as jnp
from jax.experimental import pallas as pl
from jax.experimental.pallas import tpu as pltpu


def _mha_kernel(x_ref, w_attn_ref, b_attn_ref, w_proj_ref, b_proj_ref, o_ref,
                *, n_head, batch, scale):
    BT, C = x_ref.shape
    T = BT // batch
    hd = C // n_head

    # --- Fused QKV projection: one (B*T, C) x (C, 3C) MXU op, f32 accumulate.
    x = x_ref[...].astype(jnp.bfloat16)                       # single cast of x
    qkv = jnp.dot(x, w_attn_ref[...], preferred_element_type=jnp.float32)
    qkv = qkv + b_attn_ref[...]                               # (B*T, 3C), f32

    # Fold the attention scale into q (cheaper than scaling the (T,T) scores).
    q = qkv[:, 0 * C:1 * C] * scale                           # (B*T, C)
    k = qkv[:, 1 * C:2 * C]
    v = qkv[:, 2 * C:3 * C]

    # --- Per-head attention.  Batch is the leading dim of 3-D einsums that
    # contract the last dims (no explicit k transpose).  Heads are static lane
    # slices of width hd; per-(b,h) matmuls are inherently tiny at this config
    # regardless of batching, so a static unrolled head loop is fine.
    y_heads = []
    for h in range(n_head):
        sl = slice(h * hd, (h + 1) * hd)
        q_h = q[:, sl].reshape(batch, T, hd)                  # leading-dim split only
        k_h = k[:, sl].reshape(batch, T, hd)
        v_h = v[:, sl].reshape(batch, T, hd)

        s = jnp.einsum("bqd,bkd->bqk", q_h, k_h,
                       preferred_element_type=jnp.float32)    # (B, T, T) f32
        s = s - jnp.max(s, axis=-1, keepdims=True)
        p = jnp.exp(s)
        p = p * pl.reciprocal(jnp.sum(p, axis=-1, keepdims=True))  # exact recip
        # TODO(synk): attn_dropout is identity (dropout = 0.0 / eval mode).
        y_h = jnp.einsum("bqk,bkd->bqd", p, v_h,
                         preferred_element_type=jnp.float32)  # (B, T, hd)
        y_heads.append(y_h.reshape(BT, hd))

    # Merge heads: within-vreg lane concat at H*hd = C (= 32) lanes.
    y = jnp.concatenate(y_heads, axis=-1)                     # (B*T, C), f32

    # --- Fused output projection: one (B*T, C) x (C, C) bf16 MXU op.
    o = jnp.dot(y.astype(jnp.bfloat16), w_proj_ref[...],
                preferred_element_type=jnp.float32)
    o = o + b_proj_ref[...]                                   # (B*T, C), f32
    # TODO(synk): resid_dropout is identity (dropout = 0.0 / eval mode).
    o_ref[...] = o.astype(o_ref.dtype)


def multi_head_attention(x, w_attn, b_attn, w_proj, b_proj, *, n_head):
    B, T, C = x.shape
    hd = C // n_head
    scale = 1.0 / (hd ** 0.5)

    # Fold batch into the matmul M dimension (free, contiguous reshape).
    x2 = x.reshape(B * T, C)

    kernel = functools.partial(_mha_kernel, n_head=n_head, batch=B, scale=scale)

    out = pl.pallas_call(
        kernel,
        out_shape=jax.ShapeDtypeStruct((B * T, C), x.dtype),
        grid_spec=pltpu.PrefetchScalarGridSpec(
            num_scalar_prefetch=0,
            grid=(1,),
            in_specs=[
                pl.BlockSpec((B * T, C), lambda i: (0, 0)),        # x
                pl.BlockSpec((C, 3 * C), lambda i: (0, 0)),        # w_attn (bf16)
                pl.BlockSpec((1, 3 * C), lambda i: (0, 0)),        # b_attn (f32)
                pl.BlockSpec((C, C), lambda i: (0, 0)),            # w_proj (bf16)
                pl.BlockSpec((1, C), lambda i: (0, 0)),            # b_proj (f32)
            ],
            out_specs=pl.BlockSpec((B * T, C), lambda i: (0, 0)),
        ),
        compiler_params=pltpu.CompilerParams(
            dimension_semantics=("arbitrary",)),
    )(x2,
      w_attn.astype(jnp.bfloat16), b_attn.astype(jnp.float32),
      w_proj.astype(jnp.bfloat16), b_proj.astype(jnp.float32))

    return out.reshape(B, T, C)


def reference_mha(x, w_attn, b_attn, w_proj, b_proj, *, n_head):
    """Pure-JAX f32 reference mirroring the PyTorch forward (dropout = identity)."""
    B, T, C = x.shape
    hd = C // n_head
    qkv = jnp.einsum("btc,cd->btd", x, w_attn) + b_attn[0]
    q, k, v = jnp.split(qkv, 3, axis=-1)
    q = q.reshape(B, T, n_head, hd).transpose(0, 2, 1, 3)
    k = k.reshape(B, T, n_head, hd).transpose(0, 2, 1, 3)
    v = v.reshape(B, T, n_head, hd).transpose(0, 2, 1, 3)
    att = jnp.einsum("bhqd,bhkd->bhqk", q, k) * (1.0 / hd ** 0.5)
    att = jax.nn.softmax(att, axis=-1)
    y = jnp.einsum("bhqk,bhkd->bhqd", att, v)
    y = y.transpose(0, 2, 1, 3).reshape(B, T, C)
    return jnp.einsum("btc,cd->btd", y, w_proj) + b_proj[0]


if __name__ == "__main__":
    # Config (matches the PyTorch module shapes): dim=32, num_heads=4, dropout=0.0
    B, T, C, n_head = 2, 8, 32, 4

    key = jax.random.PRNGKey(0)
    kx, kw1, kb1, kw2, kb2 = jax.random.split(key, 5)

    x = jax.random.normal(kx, (B, T, C), dtype=jnp.float32)

    # nn.Linear-style uniform +/- 1/sqrt(fan_in) init, (in, out) layout.
    bound = 1.0 / (C ** 0.5)
    w_attn = jax.random.uniform(kw1, (C, 3 * C), jnp.float32, -bound, bound)
    b_attn = jax.random.uniform(kb1, (1, 3 * C), jnp.float32, -bound, bound)
    w_proj = jax.random.uniform(kw2, (C, C), jnp.float32, -bound, bound)
    b_proj = jax.random.uniform(kb2, (1, C), jnp.float32, -bound, bound)

    out = multi_head_attention(x, w_attn, b_attn, w_proj, b_proj,
                               n_head=n_head)
    out = jax.block_until_ready(out)

    ref = reference_mha(x, w_attn, b_attn, w_proj, b_proj, n_head=n_head)
    assert out.shape == (B, T, C)
    # bf16 MXU operands for the two projections -> loosened tolerance vs f32
    # reference (typical error is well below this; attention core is f32).
    assert jnp.allclose(out, ref, atol=5e-2, rtol=5e-2), "mismatch vs reference"

    print("KERNEL_OK")
</pallas_src>

<mosaic_0001>
module attributes {stable_mosaic.version = 11 : i64} {
  func.func @_mha_kernel(%arg0: i32, %arg1: memref<16x32xf32, #tpu.memory_space<vmem>>, %arg2: memref<32x96xbf16, #tpu.memory_space<vmem>>, %arg3: memref<1x96xf32, #tpu.memory_space<vmem>>, %arg4: memref<32x32xbf16, #tpu.memory_space<vmem>>, %arg5: memref<1x32xf32, #tpu.memory_space<vmem>>, %arg6: memref<16x32xf32, #tpu.memory_space<vmem>>) attributes {dimension_semantics = [#tpu.dimension_semantics<arbitrary>], iteration_bounds = array<i64: 1>, scalar_prefetch = 0 : i64, scratch_operands = 0 : i64, tpu.core_type = #tpu.core_type<tc>, window_params = [{pipeline_mode = #tpu.pipeline_mode<synchronous>, transform_indices = @transform_0, window_bounds = array<i64: 16, 32>}, {pipeline_mode = #tpu.pipeline_mode<synchronous>, transform_indices = @transform_1, window_bounds = array<i64: 32, 96>}, {pipeline_mode = #tpu.pipeline_mode<synchronous>, transform_indices = @transform_2, window_bounds = array<i64: 1, 96>}, {pipeline_mode = #tpu.pipeline_mode<synchronous>, transform_indices = @transform_3, window_bounds = array<i64: 32, 32>}, {pipeline_mode = #tpu.pipeline_mode<synchronous>, transform_indices = @transform_4, window_bounds = array<i64: 1, 32>}, {pipeline_mode = #tpu.pipeline_mode<synchronous>, transform_indices = @transform_5, window_bounds = array<i64: 16, 32>}]} {
    %c0 = arith.constant 0 : index
    %c0_0 = arith.constant 0 : index
    %0 = vector.load %arg1[%c0, %c0_0] : memref<16x32xf32, #tpu.memory_space<vmem>>, vector<16x32xf32>
    %1 = arith.truncf %0 : vector<16x32xf32> to vector<16x32xbf16>
    %c0_1 = arith.constant 0 : index
    %c0_2 = arith.constant 0 : index
    %2 = vector.load %arg2[%c0_1, %c0_2] : memref<32x96xbf16, #tpu.memory_space<vmem>>, vector<32x96xbf16>
    %cst = arith.constant dense<0.000000e+00> : vector<16x96xf32>
    %3 = tpu.matmul %1, %2, %cst {dimension_numbers = #tpu.dot_dimension_numbers<[1], [0], [0], [1], [0, 0, 1, 1], [], []>} : vector<16x32xbf16>, vector<32x96xbf16>, vector<16x96xf32> -> vector<16x96xf32>
    %c0_3 = arith.constant 0 : index
    %c0_4 = arith.constant 0 : index
    %4 = vector.load %arg3[%c0_3, %c0_4] : memref<1x96xf32, #tpu.memory_space<vmem>>, vector<1x96xf32>
    %5 = vector.broadcast %4 : vector<1x96xf32> to vector<16x96xf32>
    %6 = arith.addf %3, %5 : vector<16x96xf32>
    %7 = vector.extract_strided_slice %6 {offsets = [0, 0], sizes = [16, 32], strides = [1, 1]} : vector<16x96xf32> to vector<16x32xf32>
    %cst_5 = arith.constant 0.353553385 : f32
    %8 = vector.broadcast %cst_5 : f32 to vector<16x32xf32>
    %9 = arith.mulf %7, %8 : vector<16x32xf32>
    %10 = vector.extract_strided_slice %6 {offsets = [0, 32], sizes = [16, 32], strides = [1, 1]} : vector<16x96xf32> to vector<16x32xf32>
    %11 = vector.extract_strided_slice %6 {offsets = [0, 64], sizes = [16, 32], strides = [1, 1]} : vector<16x96xf32> to vector<16x32xf32>
    %12 = vector.extract_strided_slice %9 {offsets = [0, 0], sizes = [16, 8], strides = [1, 1]} : vector<16x32xf32> to vector<16x8xf32>
    %13 = vector.shape_cast %12 : vector<16x8xf32> to vector<2x8x8xf32>
    %14 = vector.extract_strided_slice %10 {offsets = [0, 0], sizes = [16, 8], strides = [1, 1]} : vector<16x32xf32> to vector<16x8xf32>
    %15 = vector.shape_cast %14 : vector<16x8xf32> to vector<2x8x8xf32>
    %16 = vector.extract_strided_slice %11 {offsets = [0, 0], sizes = [16, 8], strides = [1, 1]} : vector<16x32xf32> to vector<16x8xf32>
    %17 = vector.shape_cast %16 : vector<16x8xf32> to vector<2x8x8xf32>
    "tpu.trace_start"() <{level = 10 : i32, message = "bqd,bkd->bqk"}> : () -> ()
    %cst_6 = arith.constant dense<0.000000e+00> : vector<2x8x8xf32>
    %18 = tpu.matmul %13, %15, %cst_6 {dimension_numbers = #tpu.dot_dimension_numbers<[2], [2], [1], [1], [0, 0, 0, 1, 1, 1], [0], [0]>} : vector<2x8x8xf32>, vector<2x8x8xf32>, vector<2x8x8xf32> -> vector<2x8x8xf32>
    "tpu.trace_stop"() : () -> ()
    %cst_7 = arith.constant dense<0xFF800000> : vector<2x8xf32>
    %19 = vector.multi_reduction <maximumf>, %18, %cst_7 [2] : vector<2x8x8xf32> to vector<2x8xf32>
    %20 = vector.shape_cast %19 : vector<2x8xf32> to vector<2x8x1xf32>
    %21 = vector.broadcast %20 : vector<2x8x1xf32> to vector<2x8x8xf32>
    %22 = arith.subf %18, %21 : vector<2x8x8xf32>
    %23 = math.exp %22 : vector<2x8x8xf32>
    %cst_8 = arith.constant dense<0.000000e+00> : vector<2x8xf32>
    %24 = vector.multi_reduction <add>, %23, %cst_8 [2] : vector<2x8x8xf32> to vector<2x8xf32>
    %25 = vector.shape_cast %24 : vector<2x8xf32> to vector<2x8x1xf32>
    %26 = tpu.reciprocal %25 : vector<2x8x1xf32> -> vector<2x8x1xf32>
    %27 = vector.broadcast %26 : vector<2x8x1xf32> to vector<2x8x8xf32>
    %28 = arith.mulf %23, %27 : vector<2x8x8xf32>
    "tpu.trace_start"() <{level = 10 : i32, message = "bqk,bkd->bqd"}> : () -> ()
    %cst_9 = arith.constant dense<0.000000e+00> : vector<2x8x8xf32>
    %29 = tpu.matmul %28, %17, %cst_9 {dimension_numbers = #tpu.dot_dimension_numbers<[2], [1], [1], [2], [0, 0, 0, 1, 1, 2], [0], [0]>} : vector<2x8x8xf32>, vector<2x8x8xf32>, vector<2x8x8xf32> -> vector<2x8x8xf32>
    "tpu.trace_stop"() : () -> ()
    %30 = vector.shape_cast %29 : vector<2x8x8xf32> to vector<16x8xf32>
    %31 = vector.extract_strided_slice %9 {offsets = [0, 8], sizes = [16, 8], strides = [1, 1]} : vector<16x32xf32> to vector<16x8xf32>
    %32 = vector.shape_cast %31 : vector<16x8xf32> to vector<2x8x8xf32>
    %33 = vector.extract_strided_slice %10 {offsets = [0, 8], sizes = [16, 8], strides = [1, 1]} : vector<16x32xf32> to vector<16x8xf32>
    %34 = vector.shape_cast %33 : vector<16x8xf32> to vector<2x8x8xf32>
    %35 = vector.extract_strided_slice %11 {offsets = [0, 8], sizes = [16, 8], strides = [1, 1]} : vector<16x32xf32> to vector<16x8xf32>
    %36 = vector.shape_cast %35 : vector<16x8xf32> to vector<2x8x8xf32>
    "tpu.trace_start"() <{level = 10 : i32, message = "bqd,bkd->bqk"}> : () -> ()
    %cst_10 = arith.constant dense<0.000000e+00> : vector<2x8x8xf32>
    %37 = tpu.matmul %32, %34, %cst_10 {dimension_numbers = #tpu.dot_dimension_numbers<[2], [2], [1], [1], [0, 0, 0, 1, 1, 1], [0], [0]>} : vector<2x8x8xf32>, vector<2x8x8xf32>, vector<2x8x8xf32> -> vector<2x8x8xf32>
    "tpu.trace_stop"() : () -> ()
    %cst_11 = arith.constant dense<0xFF800000> : vector<2x8xf32>
    %38 = vector.multi_reduction <maximumf>, %37, %cst_11 [2] : vector<2x8x8xf32> to vector<2x8xf32>
    %39 = vector.shape_cast %38 : vector<2x8xf32> to vector<2x8x1xf32>
    %40 = vector.broadcast %39 : vector<2x8x1xf32> to vector<2x8x8xf32>
    %41 = arith.subf %37, %40 : vector<2x8x8xf32>
    %42 = math.exp %41 : vector<2x8x8xf32>
    %cst_12 = arith.constant dense<0.000000e+00> : vector<2x8xf32>
    %43 = vector.multi_reduction <add>, %42, %cst_12 [2] : vector<2x8x8xf32> to vector<2x8xf32>
    %44 = vector.shape_cast %43 : vector<2x8xf32> to vector<2x8x1xf32>
    %45 = tpu.reciprocal %44 : vector<2x8x1xf32> -> vector<2x8x1xf32>
    %46 = vector.broadcast %45 : vector<2x8x1xf32> to vector<2x8x8xf32>
    %47 = arith.mulf %42, %46 : vector<2x8x8xf32>
    "tpu.trace_start"() <{level = 10 : i32, message = "bqk,bkd->bqd"}> : () -> ()
    %cst_13 = arith.constant dense<0.000000e+00> : vector<2x8x8xf32>
    %48 = tpu.matmul %47, %36, %cst_13 {dimension_numbers = #tpu.dot_dimension_numbers<[2], [1], [1], [2], [0, 0, 0, 1, 1, 2], [0], [0]>} : vector<2x8x8xf32>, vector<2x8x8xf32>, vector<2x8x8xf32> -> vector<2x8x8xf32>
    "tpu.trace_stop"() : () -> ()
    %49 = vector.shape_cast %48 : vector<2x8x8xf32> to vector<16x8xf32>
    %50 = vector.extract_strided_slice %9 {offsets = [0, 16], sizes = [16, 8], strides = [1, 1]} : vector<16x32xf32> to vector<16x8xf32>
    %51 = vector.shape_cast %50 : vector<16x8xf32> to vector<2x8x8xf32>
    %52 = vector.extract_strided_slice %10 {offsets = [0, 16], sizes = [16, 8], strides = [1, 1]} : vector<16x32xf32> to vector<16x8xf32>
    %53 = vector.shape_cast %52 : vector<16x8xf32> to vector<2x8x8xf32>
    %54 = vector.extract_strided_slice %11 {offsets = [0, 16], sizes = [16, 8], strides = [1, 1]} : vector<16x32xf32> to vector<16x8xf32>
    %55 = vector.shape_cast %54 : vector<16x8xf32> to vector<2x8x8xf32>
    "tpu.trace_start"() <{level = 10 : i32, message = "bqd,bkd->bqk"}> : () -> ()
    %cst_14 = arith.constant dense<0.000000e+00> : vector<2x8x8xf32>
    %56 = tpu.matmul %51, %53, %cst_14 {dimension_numbers = #tpu.dot_dimension_numbers<[2], [2], [1], [1], [0, 0, 0, 1, 1, 1], [0], [0]>} : vector<2x8x8xf32>, vector<2x8x8xf32>, vector<2x8x8xf32> -> vector<2x8x8xf32>
    "tpu.trace_stop"() : () -> ()
    %cst_15 = arith.constant dense<0xFF800000> : vector<2x8xf32>
    %57 = vector.multi_reduction <maximumf>, %56, %cst_15 [2] : vector<2x8x8xf32> to vector<2x8xf32>
    %58 = vector.shape_cast %57 : vector<2x8xf32> to vector<2x8x1xf32>
    %59 = vector.broadcast %58 : vector<2x8x1xf32> to vector<2x8x8xf32>
    %60 = arith.subf %56, %59 : vector<2x8x8xf32>
    %61 = math.exp %60 : vector<2x8x8xf32>
    %cst_16 = arith.constant dense<0.000000e+00> : vector<2x8xf32>
    %62 = vector.multi_reduction <add>, %61, %cst_16 [2] : vector<2x8x8xf32> to vector<2x8xf32>
    %63 = vector.shape_cast %62 : vector<2x8xf32> to vector<2x8x1xf32>
    %64 = tpu.reciprocal %63 : vector<2x8x1xf32> -> vector<2x8x1xf32>
    %65 = vector.broadcast %64 : vector<2x8x1xf32> to vector<2x8x8xf32>
    %66 = arith.mulf %61, %65 : vector<2x8x8xf32>
    "tpu.trace_start"() <{level = 10 : i32, message = "bqk,bkd->bqd"}> : () -> ()
    %cst_17 = arith.constant dense<0.000000e+00> : vector<2x8x8xf32>
    %67 = tpu.matmul %66, %55, %cst_17 {dimension_numbers = #tpu.dot_dimension_numbers<[2], [1], [1], [2], [0, 0, 0, 1, 1, 2], [0], [0]>} : vector<2x8x8xf32>, vector<2x8x8xf32>, vector<2x8x8xf32> -> vector<2x8x8xf32>
    "tpu.trace_stop"() : () -> ()
    %68 = vector.shape_cast %67 : vector<2x8x8xf32> to vector<16x8xf32>
    %69 = vector.extract_strided_slice %9 {offsets = [0, 24], sizes = [16, 8], strides = [1, 1]} : vector<16x32xf32> to vector<16x8xf32>
    %70 = vector.shape_cast %69 : vector<16x8xf32> to vector<2x8x8xf32>
    %71 = vector.extract_strided_slice %10 {offsets = [0, 24], sizes = [16, 8], strides = [1, 1]} : vector<16x32xf32> to vector<16x8xf32>
    %72 = vector.shape_cast %71 : vector<16x8xf32> to vector<2x8x8xf32>
    %73 = vector.extract_strided_slice %11 {offsets = [0, 24], sizes = [16, 8], strides = [1, 1]} : vector<16x32xf32> to vector<16x8xf32>
    %74 = vector.shape_cast %73 : vector<16x8xf32> to vector<2x8x8xf32>
    "tpu.trace_start"() <{level = 10 : i32, message = "bqd,bkd->bqk"}> : () -> ()
    %cst_18 = arith.constant dense<0.000000e+00> : vector<2x8x8xf32>
    %75 = tpu.matmul %70, %72, %cst_18 {dimension_numbers = #tpu.dot_dimension_numbers<[2], [2], [1], [1], [0, 0, 0, 1, 1, 1], [0], [0]>} : vector<2x8x8xf32>, vector<2x8x8xf32>, vector<2x8x8xf32> -> vector<2x8x8xf32>
    "tpu.trace_stop"() : () -> ()
    %cst_19 = arith.constant dense<0xFF800000> : vector<2x8xf32>
    %76 = vector.multi_reduction <maximumf>, %75, %cst_19 [2] : vector<2x8x8xf32> to vector<2x8xf32>
    %77 = vector.shape_cast %76 : vector<2x8xf32> to vector<2x8x1xf32>
    %78 = vector.broadcast %77 : vector<2x8x1xf32> to vector<2x8x8xf32>
    %79 = arith.subf %75, %78 : vector<2x8x8xf32>
    %80 = math.exp %79 : vector<2x8x8xf32>
    %cst_20 = arith.constant dense<0.000000e+00> : vector<2x8xf32>
    %81 = vector.multi_reduction <add>, %80, %cst_20 [2] : vector<2x8x8xf32> to vector<2x8xf32>
    %82 = vector.shape_cast %81 : vector<2x8xf32> to vector<2x8x1xf32>
    %83 = tpu.reciprocal %82 : vector<2x8x1xf32> -> vector<2x8x1xf32>
    %84 = vector.broadcast %83 : vector<2x8x1xf32> to vector<2x8x8xf32>
    %85 = arith.mulf %80, %84 : vector<2x8x8xf32>
    "tpu.trace_start"() <{level = 10 : i32, message = "bqk,bkd->bqd"}> : () -> ()
    %cst_21 = arith.constant dense<0.000000e+00> : vector<2x8x8xf32>
    %86 = tpu.matmul %85, %74, %cst_21 {dimension_numbers = #tpu.dot_dimension_numbers<[2], [1], [1], [2], [0, 0, 0, 1, 1, 2], [0], [0]>} : vector<2x8x8xf32>, vector<2x8x8xf32>, vector<2x8x8xf32> -> vector<2x8x8xf32>
    "tpu.trace_stop"() : () -> ()
    %87 = vector.shape_cast %86 : vector<2x8x8xf32> to vector<16x8xf32>
    %88 = tpu.concatenate %30, %49, %68, %87 in 1 : vector<16x8xf32>, vector<16x8xf32>, vector<16x8xf32>, vector<16x8xf32> -> vector<16x32xf32>
    %89 = arith.truncf %88 : vector<16x32xf32> to vector<16x32xbf16>
    %c0_22 = arith.constant 0 : index
    %c0_23 = arith.constant 0 : index
    %90 = vector.load %arg4[%c0_22, %c0_23] : memref<32x32xbf16, #tpu.memory_space<vmem>>, vector<32x32xbf16>
    %cst_24 = arith.constant dense<0.000000e+00> : vector<16x32xf32>
    %91 = tpu.matmul %89, %90, %cst_24 {dimension_numbers = #tpu.dot_dimension_numbers<[1], [0], [0], [1], [0, 0, 1, 1], [], []>} : vector<16x32xbf16>, vector<32x32xbf16>, vector<16x32xf32> -> vector<16x32xf32>
    %c0_25 = arith.constant 0 : index
    %c0_26 = arith.constant 0 : index
    %92 = vector.load %arg5[%c0_25, %c0_26] : memref<1x32xf32, #tpu.memory_space<vmem>>, vector<1x32xf32>
    %93 = vector.broadcast %92 : vector<1x32xf32> to vector<16x32xf32>
    %94 = arith.addf %91, %93 : vector<16x32xf32>
    %c0_27 = arith.constant 0 : index
    %c0_28 = arith.constant 0 : index
    %95 = vector.load %arg6[%c0_27, %c0_28] : memref<16x32xf32, #tpu.memory_space<vmem>>, vector<16x32xf32>
    tpu.vector_store %arg6[%c0_27, %c0_28], %94 {strides = array<i32>} : memref<16x32xf32, #tpu.memory_space<vmem>>, vector<16x32xf32>,
    return
  }
  func.func @transform_0(%arg0: i32) -> (i32, i32) {
    %c0_i32 = arith.constant 0 : i32
    %c0_i32_0 = arith.constant 0 : i32
    %c0_i32_1 = arith.constant 0 : i32
    return %c0_i32, %c0_i32_0 : i32, i32
  }
  func.func @transform_1(%arg0: i32) -> (i32, i32) {
    %c0_i32 = arith.constant 0 : i32
    %c0_i32_0 = arith.constant 0 : i32
    %c0_i32_1 = arith.constant 0 : i32
    return %c0_i32, %c0_i32_0 : i32, i32
  }
  func.func @transform_2(%arg0: i32) -> (i32, i32) {
    %c0_i32 = arith.constant 0 : i32
    %c0_i32_0 = arith.constant 0 : i32
    %c0_i32_1 = arith.constant 0 : i32
    return %c0_i32, %c0_i32_0 : i32, i32
  }
  func.func @transform_3(%arg0: i32) -> (i32, i32) {
    %c0_i32 = arith.constant 0 : i32
    %c0_i32_0 = arith.constant 0 : i32
    %c0_i32_1 = arith.constant 0 : i32
    return %c0_i32, %c0_i32_0 : i32, i32
  }
  func.func @transform_4(%arg0: i32) -> (i32, i32) {
    %c0_i32 = arith.constant 0 : i32
    %c0_i32_0 = arith.constant 0 : i32
    %c0_i32_1 = arith.constant 0 : i32
    return %c0_i32, %c0_i32_0 : i32, i32
  }
  func.func @transform_5(%arg0: i32) -> (i32, i32) {
    %c0_i32 = arith.constant 0 : i32
    %c0_i32_0 = arith.constant 0 : i32
    %c0_i32_1 = arith.constant 0 : i32
    return %c0_i32, %c0_i32_0 : i32, i32
  }
}

</mosaic_0001>

<bundles_post_ra>
// kernel: tpu_custom_call.1
= control target key start
LH: loop header
LB: loop body
LE: loop exit
PB: predicated region body
PF: predicated region fallthrough
CT: control target
= control target key end

     0   :  { %10 = vsyncpa [#allocation3], 0  ;;  %s2182_s0 = inlined_call_operand.hbm [shape: f32[16,32], index: 0, kind: input, shape index: {}]   ;;  %s2183_s1 = inlined_call_operand.hbm [shape: bf16[32,96], index: 1, kind: input, shape index: {}]   ;;  %s2184_s2 = inlined_call_operand.vmem [shape: f32[1,96], index: 2, kind: input, shape index: {}]   ;;  %s2185_s3 = inlined_call_operand.hbm [shape: bf16[32,32], index: 3, kind: input, shape index: {}]   ;;  %s2186_s4 = inlined_call_operand.vmem [shape: f32[1,32], index: 4, kind: input, shape index: {}]   ;;  %s2187_s5 = inlined_call_operand.hbm [shape: f32[16,32], index: 5, kind: output, shape index: {}]  }
   0x1   :  { %11 = vsyncpa [#allocation6], 0 }
   0x2   :  { %12 = vsyncpa [#allocation4], 0  ;;  %s1910_s18 = smov [#allocation5]   ;;  %s1816_s22 = scalar_lea.hbm %s2183_s1, 256 }
   0x3   :  { %s30_s19 = sshll.u32 %s1910_s18, 4  ;;  %p1817_p0 = scmp.ne.s32.totalorder %s2183_s1, %s1816_s22  ;;  %s31_s19 = int_to_ptr.vmem [resolvable:$true] %s30_s19 }
   0x4   :  { %p1820_p1 = scmp.lt.u32.totalorder %s1816_s22, %s2183_s1 }
   0x6   :  { %p1822_p2 = pnand %p1820_p1, %p1817_p0 }
   0x8   :  { %1825 = shalt.err (!%p1822_p2)
}
   0x9   :  { %s1826_s27 = scalar_lea.vmem %s31_s19, 256  ;;  %p1831_p4 = scmp.lt.s32.totalorder %s31_s19, %s31_s19 }
   0xa   :  { %p1827_p3 = scmp.ne.s32.totalorder %s31_s19, %s1826_s27  ;;  %p1832_p5 = scmp.lt.s32.totalorder %s1826_s27, %s1826_s27 }
   0xc   :  { %p1833_p6 = por %p1832_p5, %p1831_p4 }
   0xe   :  { %p1834_p7 = pnand %p1833_p6, %p1827_p3 }
  0x10   :  { %1837 = shalt.err (!%p1834_p7)
}
  0x11   :  { %s1911_s28 = smov 64   ;;  %s1912_s29 = smov 4  }
  0x12   :  { %36 = dma.hbm_to_vmem [thread:$0]  %s2183_s1, 256, %s31_s19, [#allocation6], %s1911_s28, %s1911_s28, %s1912_s29  }
  0x13   :  { %s1913_s7 = smov [#allocation2]   ;;  %s1838_s11 = scalar_lea.hbm %s2182_s0, 256 }
  0x14   :  { %s18_s8 = sshll.u32 %s1913_s7, 4  ;;  %p1839_p8 = scmp.ne.s32.totalorder %s2182_s0, %s1838_s11  ;;  %s19_s8 = int_to_ptr.vmem [resolvable:$true] %s18_s8 }
  0x15   :  { %p1842_p9 = scmp.lt.u32.totalorder %s1838_s11, %s2182_s0 }
  0x17   :  { %p1844_p10 = pnand %p1842_p9, %p1839_p8 }
  0x19   :  { %1847 = shalt.err (!%p1844_p10)
}
  0x1a   :  { %s1848_s16 = scalar_lea.vmem %s19_s8, 256  ;;  %p1853_p12 = scmp.lt.s32.totalorder %s19_s8, %s19_s8 }
  0x1b   :  { %p1849_p11 = scmp.ne.s32.totalorder %s19_s8, %s1848_s16  ;;  %p1854_p13 = scmp.lt.s32.totalorder %s1848_s16, %s1848_s16 }
  0x1d   :  { %p1855_p0 = por %p1854_p13, %p1853_p12 }
  0x1f   :  { %p1856_p1 = pnand %p1855_p0, %p1849_p11 }
  0x21   :  { %1859 = shalt.err (!%p1856_p1)
}
  0x22   :  { %s1914_s1 = smov 128   ;;  %s1915_s17 = smov 8  }
  0x23   :  { %24 = dma.hbm_to_vmem [thread:$0]  %s2182_s0, 256, %s19_s8, [#allocation3], %s1914_s1, %s1914_s1, %s1915_s17  }
  0x24   :  { %s1916_s20 = smov [#allocation7]   ;;  %s1860_s24 = scalar_lea.hbm %s2185_s3, 256 }
  0x25   :  { %s44_s21 = sshll.u32 %s1916_s20, 4  ;;  %p1861_p2 = scmp.ne.s32.totalorder %s2185_s3, %s1860_s24  ;;  %s45_s21 = int_to_ptr.vmem [resolvable:$true] %s44_s21 }
  0x26   :  { %p1864_p3 = scmp.lt.u32.totalorder %s1860_s24, %s2185_s3 }
  0x28   :  { %p1866_p4 = pnand %p1864_p3, %p1861_p2 }
  0x2a   :  { %1869 = shalt.err (!%p1866_p4)
}
  0x2b   :  { %s1870_s6 = scalar_lea.vmem %s45_s21, 256  ;;  %p1875_p6 = scmp.lt.s32.totalorder %s45_s21, %s45_s21 }
  0x2c   :  { %p1871_p5 = scmp.ne.s32.totalorder %s45_s21, %s1870_s6  ;;  %p1876_p7 = scmp.lt.s32.totalorder %s1870_s6, %s1870_s6 }
  0x2e   :  { %p1877_p8 = por %p1876_p7, %p1875_p6 }
  0x30   :  { %p1878_p9 = pnand %p1877_p8, %p1871_p5 }
  0x32   :  { %1881 = shalt.err (!%p1878_p9)
}
  0x33   :  { %50 = dma.hbm_to_vmem [thread:$0]  %s2185_s3, 256, %s45_s21, [#allocation6], %s1911_s28, %s1911_s28, %s1912_s29  }
  0x34   :  { %1904 = dma.done.wait [#allocation3], 256  }
  0x35   :  { %1905 = vsyncadd [#allocation3], 4294967040 }
  0x36   :  { %1906 = dma.done.wait [#allocation6], 512  }
  0x37   :  { %1907 = vsyncadd [#allocation6], 4294966784  ;;  %v1917_v0 = vmov 0.0   ;;  %vm1918_vm0 = vmmov 0   ;;  %v1780_v1 = vld [vmem:[#allocation5] sm:$0xff]   ;;  %v1781_v2 = vld [vmem:[#allocation5 + $0x8] sm:$0xff]  }
  0x38   :  { %1647 = vmatprep.subr.bf16.mxu0 %v1917_v0  ;;  %1651 = vmatprep.mubr.msk.bf16.mxu0 %vm1918_vm0, %v1917_v0  ;;  %v63_v3 = vld [vmem:[#allocation2] sm:$0xff]  ;;  %v64_v4 = vld [vmem:[#allocation2 + $0x8] sm:$0xff]  ;;  %vm89_vm1 = vcmask 261120   ;;  %s1919_s8 = smov 96   ;;  %vm139_vm2 = vcmask 64512   ;;  %s1922_s9 = smov 56  }
  0x39   :  { %1660 = vmatprep.subr.mxu1 %v1917_v0  ;;  %1662 = vmatprep.mubr.msk.f32.mxu1 %vm1918_vm0, %v1917_v0  ;;  %v65_v5 = vpack.c.bf16 %v64_v4, %v63_v3  ;;  %v1577_v6 = vld [vmem:[%s2184_s2] ss:$0 sm:$0xff]  ;;  %s1920_s2 = smov 88   ;;  %s1923_s10 = smov 80   ;;  %vm1483_vm3 = vcmask 130048   ;;  %vm1486_vm4 = vcmask 195584  }
  0x3a   :  { %1648 = vmatpush3.bf16.msra.mxu0 %v1780_v1  ;;  %s1924_s11 = smov 112   ;;  %s1925_s12 = smov 48  }
  0x3b   :  { %1649 = vmatprep.subr.bf16.mxu0 %v1917_v0  ;;  %s1926_s13 = smov 72   ;;  %s1927_s14 = smov 104  }
  0x3c   :  { %s1928_s15 = smov 40   ;;  %s1929_s16 = smov 16  }
  0x3d   :  { %s1930_s18 = smov 24   ;;  %s1931_s21 = smov [#allocation8]  }
  0x3e   :  { %1650 = vmatpush3.bf16.msra.mxu0 %v1781_v2  ;;  %s1564_s22 = sshll.u32 %s1931_s21, 4  ;;  %s1565_s22 = int_to_ptr.vmem [resolvable:$true] %s1564_s22 }
  0x3f   :  { %1655 = vmatprep.subr.mxu0 %v1917_v0  ;;  %s1882_s23 = scalar_lea.vmem %s1565_s22, 256  ;;  %p1887_p11 = scmp.lt.s32.totalorder %s1565_s22, %s1565_s22 }
  0x40   :  { %p1883_p10 = scmp.ne.s32.totalorder %s1565_s22, %s1882_s23  ;;  %p1888_p12 = scmp.lt.s32.totalorder %s1882_s23, %s1882_s23 }
  0x41   :  { %1652 = vmatmul.mubr.msk.bf16.vlgmr.msra.gmra.mrb[0].mxu0 %vm89_vm1, %v65_v5 }
  0x42   :  { %1657 = vmatprep.mubr.msk.f32.mxu0 %vm1918_vm0, %v1917_v0  ;;  %p1889_p13 = por %p1888_p12, %p1887_p11 }
  0x44   :  { %p1890_p0 = pnand %p1889_p13, %p1883_p10 }
 0x114   :  { %v127_v7 = vpop.f32.mrb[0].mxu0 }
 0x115   :  { %v2021_v8 = vadd.f32 %v1577_v6, %v127_v7  ;;  %v1653_v9 = vpop.f32.mrb[1].mxu0 }
 0x116   :  { %v130_v10 = vpop.f32.mrb[2].mxu0 }
 0x117   :  { %137 = vrot.lane.b32.xlu0 %v2021_v8, %s1919_s8  ;;  %v1654_v11 = vpop.f32.mrb[3].mxu0  ;;  %v2024_v12 = vadd.f32 %v1577_v6, %v130_v10  ;;  %v2029_v14 = vmul.f32 0.35355338, %v2021_v8 }
 0x119   :  { %v2038_v16 = vmul.f32 0.35355338, %v2024_v12 }
 0x11b   :  { %216 = vrot.lane.b32.xlu0 %v2024_v12, %s1919_s8 }
 0x189   :  { %v138_v13 = vpop.permute.xlu0 %137 }
 0x18a   :  { %1656 = vmatpush3.xpose.msk.msra.mxu0 %vm139_vm2, %v138_v13 }
 0x18b   :  { %1670 = vmatprep.subr.mxu0 %v1917_v0 }
 0x18d   :  { %1658 = vmatmul.mubr.msk.f32.vlgmr.msra.gmra.mrb[4].mxu0 %vm139_vm2, %v2029_v14  ;;  %v217_v15 = vpop.permute.xlu0 %216 }
 0x18e   :  { %1661 = vmatpush3.xpose.msk.msra.mxu1 %vm139_vm2, %v217_v15  ;;  %1672 = vmatprep.mubr.msk.f32.mxu0 %vm1918_vm0, %v1917_v0 }
 0x18f   :  { %1665 = vmatprep.subr.mxu1 %v1917_v0 }
 0x191   :  { %1663 = vmatmul.mubr.msk.f32.vlgmr.msra.gmra.mrb[0].mxu1 %vm139_vm2, %v2038_v16 }
 0x192   :  { %1667 = vmatprep.mubr.msk.f32.mxu1 %vm1918_vm0, %v1917_v0 }
 0x260   :  { %v211_v17 = vpop.f32.mrb[4].mxu0 }
 0x261   :  { %v1659_v18 = vpop.f32.mrb[5].mxu0  ;;  %v293_v19 = vsel %vm139_vm2, %v211_v17, -inf }
 0x262   :  { %294 = vmax.xlane.f32.xlu1 %v293_v19 }
 0x264   :  { %v289_v20 = vpop.f32.mrb[0].mxu1 }
 0x265   :  { %v1664_v21 = vpop.f32.mrb[1].mxu1  ;;  %v296_v22 = vsel %vm139_vm2, %v289_v20, -inf }
 0x266   :  { %297 = vmax.xlane.f32.xlu1 %v296_v22 }
 0x277   :  { %315 = vrot.lane.b32.xlu1 %v2021_v8, %s1911_s28 }
 0x27b   :  { %391 = vrot.lane.b32.xlu1 %v2024_v12, %s1911_s28  ;;  %s1921_s28 = smov 120  }
 0x27f   :  { %469 = vrot.lane.b32.xlu1 %v2021_v8, %s1920_s2 }
 0x283   :  { %547 = vrot.lane.b32.xlu1 %v2024_v12, %s1920_s2 }
 0x2ef   :  { %v295_v23 = vpop.xlane.xlu1 %294 }
 0x2f0   :  { %v299_v24 = vsub.f32 %v211_v17, %v295_v23 }
 0x2f2   :  { %v301_v25 = vmul.f32 1.442695, %v299_v24 }
 0x2f3   :  { %v298_v26 = vpop.xlane.xlu1 %297 }
 0x2f4   :  { %1784 = vpow2.f32 %v301_v25  ;;  %v300_v27 = vsub.f32 %v289_v20, %v298_v26 }
 0x2f6   :  { %v303_v28 = vmul.f32 1.442695, %v300_v27 }
 0x2f7   :  { %v316_v29 = vpop.permute.xlu1 %315 }
 0x2f8   :  { %1786 = vpow2.f32 %v303_v28  ;;  %1666 = vmatpush3.msra.mxu1 %v316_v29 }
 0x2f9   :  { %1675 = vmatprep.subr.mxu1 %v1917_v0 }
 0x2fb   :  { %v392_v30 = vpop.permute.xlu1 %391 }
 0x2fc   :  { %1671 = vmatpush3.msra.mxu0 %v392_v30 }
 0x2fd   :  { %1680 = vmatprep.subr.mxu0 %v1917_v0 }
 0x2fe   :  { %v1785_v31 = vpop.eup %1784 }
 0x2ff   :  { %v305_v32 = vsel %vm139_vm2, %v1785_v31, 0.0  ;;  %v470_v35 = vpop.permute.xlu1 %469 }
 0x300   :  { %306 = vadd.xlane.f32.xlu0 %v305_v32 }
 0x302   :  { %v1787_v33 = vpop.eup %1786 }
 0x303   :  { %v308_v34 = vsel %vm139_vm2, %v1787_v33, 0.0  ;;  %v548_v36 = vpop.permute.xlu1 %547 }
 0x304   :  { %309 = vadd.xlane.f32.xlu1 %v308_v34 }
 0x315   :  { %545 = vrot.lane.b32.xlu1 %v2038_v16, %s1921_s28 }
 0x316   :  { %467 = vrot.lane.b32.xlu0 %v2029_v14, %s1921_s28 }
 0x38d   :  { %v307_v37 = vpop.xlane.xlu0 %306 }
 0x38e   :  { %1788 = vrcp.f32 %v307_v37 }
 0x391   :  { %v310_v38 = vpop.xlane.xlu1 %309  ;;  %v468_v43 = vpop.permute.xlu0 %467 }
 0x392   :  { %1790 = vrcp.f32 %v310_v38 }
 0x395   :  { %v546_v44 = vpop.permute.xlu1 %545 }
 0x398   :  { %v1789_v39 = vpop.eup %1788 }
 0x399   :  { %v313_v40 = vmul.f32 %v1789_v39, %v1785_v31 }
 0x39b   :  { %1668 = vmatmul.mubr.msk.f32.vlgmr.msra.gmra.mrb[2].mxu1 %vm139_vm2, %v313_v40 }
 0x39c   :  { %v1791_v41 = vpop.eup %1790  ;;  %1676 = vmatpush3.xpose.msk.msra.mxu1 %vm139_vm2, %v470_v35  ;;  %1677 = vmatprep.mubr.msk.f32.mxu1 %vm1918_vm0, %v1917_v0 }
 0x39d   :  { %v314_v42 = vmul.f32 %v1791_v41, %v1787_v33  ;;  %1685 = vmatprep.subr.mxu1 %v1917_v0 }
 0x39f   :  { %1673 = vmatmul.mubr.msk.f32.vlgmr.msra.gmra.mrb[6].mxu0 %vm139_vm2, %v314_v42  ;;  %1678 = vmatmul.mubr.msk.f32.vlgmr.msra.gmra.mrb[4].mxu1 %vm139_vm2, %v468_v43 }
 0x3a0   :  { %1681 = vmatpush3.xpose.msk.msra.mxu0 %vm139_vm2, %v548_v36  ;;  %1682 = vmatprep.mubr.msk.f32.mxu0 %vm1918_vm0, %v1917_v0 }
 0x3a1   :  { %1690 = vmatprep.subr.mxu0 %v1917_v0  ;;  %1687 = vmatprep.mubr.msk.f32.mxu1 %vm1918_vm0, %v1917_v0 }
 0x3a3   :  { %1683 = vmatmul.mubr.msk.f32.vlgmr.msra.gmra.mrb[8].mxu0 %vm139_vm2, %v546_v44 }
 0x3a4   :  { %1692 = vmatprep.mubr.msk.f32.mxu0 %vm1918_vm0, %v1917_v0 }
 0x46e   :  { %v2075_v45 = vpop.f32.mrb[2].mxu1 }
 0x46f   :  { %v1669_v46 = vpop.f32.mrb[3].mxu1 }
 0x472   :  { %v2077_v47 = vpop.f32.mrb[6].mxu0  ;;  %v541_v48 = vpop.f32.mrb[4].mxu1 }
 0x473   :  { %v1674_v49 = vpop.f32.mrb[7].mxu0  ;;  %v1679_v50 = vpop.f32.mrb[5].mxu1  ;;  %v623_v51 = vsel %vm139_vm2, %v541_v48, -inf }
 0x474   :  { %624 = vmax.xlane.f32.xlu1 %v623_v51 }
 0x476   :  { %v619_v52 = vpop.f32.mrb[8].mxu0 }
 0x477   :  { %v1684_v53 = vpop.f32.mrb[9].mxu0  ;;  %v626_v54 = vsel %vm139_vm2, %v619_v52, -inf }
 0x478   :  { %627 = vmax.xlane.f32.xlu0 %v626_v54 }
 0x485   :  { %645 = vrot.lane.b32.xlu1 %v2021_v8, %s1922_s9 }
 0x489   :  { %799 = vrot.lane.b32.xlu1 %v2021_v8, %s1923_s10 }
 0x48d   :  { %877 = vrot.lane.b32.xlu1 %v2024_v12, %s1923_s10 }
 0x48e   :  { %721 = vrot.lane.b32.xlu0 %v2024_v12, %s1922_s9 }
 0x492   :  { %797 = vrot.lane.b32.xlu0 %v2029_v14, %s1924_s11 }
 0x501   :  { %v625_v55 = vpop.xlane.xlu1 %624 }
 0x502   :  { %v629_v56 = vsub.f32 %v541_v48, %v625_v55 }
 0x504   :  { %v631_v57 = vmul.f32 1.442695, %v629_v56 }
 0x505   :  { %v646_v58 = vpop.permute.xlu1 %645  ;;  %v628_v59 = vpop.xlane.xlu0 %627 }
 0x506   :  { %1792 = vpow2.f32 %v631_v57  ;;  %v630_v60 = vsub.f32 %v619_v52, %v628_v59  ;;  %1686 = vmatpush3.msra.mxu1 %v646_v58 }
 0x507   :  { %1695 = vmatprep.subr.mxu1 %v1917_v0 }
 0x508   :  { %v633_v61 = vmul.f32 1.442695, %v630_v60 }
 0x509   :  { %v722_v62 = vpop.permute.xlu0 %721  ;;  %v800_v4 = vpop.permute.xlu1 %799 }
 0x50a   :  { %1794 = vpow2.f32 %v633_v61  ;;  %1691 = vmatpush3.msra.mxu0 %v722_v62 }
 0x50b   :  { %1700 = vmatprep.subr.mxu0 %v1917_v0 }
 0x50d   :  { %v878_v5 = vpop.permute.xlu1 %877  ;;  %v798_v15 = vpop.permute.xlu0 %797 }
 0x510   :  { %v1793_v63 = vpop.eup %1792 }
 0x511   :  { %v635_v1 = vsel %vm139_vm2, %v1793_v63, 0.0 }
 0x512   :  { %636 = vadd.xlane.f32.xlu1 %v635_v1 }
 0x514   :  { %v1795_v2 = vpop.eup %1794 }
 0x515   :  { %v638_v3 = vsel %vm139_vm2, %v1795_v2, 0.0 }
 0x516   :  { %639 = vadd.xlane.f32.xlu1 %v638_v3 }
 0x527   :  { %875 = vrot.lane.b32.xlu1 %v2038_v16, %s1924_s11 }
 0x59f   :  { %v637_v6 = vpop.xlane.xlu1 %636 }
 0x5a0   :  { %1796 = vrcp.f32 %v637_v6 }
 0x5a3   :  { %v640_v7 = vpop.xlane.xlu1 %639 }
 0x5a4   :  { %1798 = vrcp.f32 %v640_v7 }
 0x5a7   :  { %v876_v17 = vpop.permute.xlu1 %875 }
 0x5aa   :  { %v1797_v9 = vpop.eup %1796 }
 0x5ab   :  { %v643_v10 = vmul.f32 %v1797_v9, %v1793_v63 }
 0x5ad   :  { %1688 = vmatmul.mubr.msk.f32.vlgmr.msra.gmra.mrb[6].mxu1 %vm139_vm2, %v643_v10 }
 0x5ae   :  { %v1799_v11 = vpop.eup %1798  ;;  %1696 = vmatpush3.xpose.msk.msra.mxu1 %vm139_vm2, %v800_v4  ;;  %1697 = vmatprep.mubr.msk.f32.mxu1 %vm1918_vm0, %v1917_v0 }
 0x5af   :  { %v644_v13 = vmul.f32 %v1799_v11, %v1795_v2  ;;  %1705 = vmatprep.subr.mxu1 %v1917_v0 }
 0x5b1   :  { %1693 = vmatmul.mubr.msk.f32.vlgmr.msra.gmra.mrb[10].mxu0 %vm139_vm2, %v644_v13  ;;  %1698 = vmatmul.mubr.msk.f32.vlgmr.msra.gmra.mrb[8].mxu1 %vm139_vm2, %v798_v15 }
 0x5b2   :  { %1701 = vmatpush3.xpose.msk.msra.mxu0 %vm139_vm2, %v878_v5  ;;  %1702 = vmatprep.mubr.msk.f32.mxu0 %vm1918_vm0, %v1917_v0 }
 0x5b3   :  { %1710 = vmatprep.subr.mxu0 %v1917_v0  ;;  %1707 = vmatprep.mubr.msk.f32.mxu1 %vm1918_vm0, %v1917_v0 }
 0x5b5   :  { %1703 = vmatmul.mubr.msk.f32.vlgmr.msra.gmra.mrb[12].mxu0 %vm139_vm2, %v876_v17 }
 0x5b6   :  { %1712 = vmatprep.mubr.msk.f32.mxu0 %vm1918_vm0, %v1917_v0 }
 0x680   :  { %v2107_v18 = vpop.f32.mrb[6].mxu1 }
 0x681   :  { %v1689_v19 = vpop.f32.mrb[7].mxu1 }
 0x684   :  { %v2109_v20 = vpop.f32.mrb[10].mxu0  ;;  %v871_v21 = vpop.f32.mrb[8].mxu1 }
 0x685   :  { %v1765_v22 = vpack.i.bf16 %v2109_v20, %v2107_v18  ;;  %v1694_v23 = vpop.f32.mrb[11].mxu0  ;;  %v1699_v24 = vpop.f32.mrb[9].mxu1  ;;  %v953_v25 = vsel %vm139_vm2, %v871_v21, -inf  ;;  %v1782_v20 = vld [vmem:[#allocation7] sm:$0xff]  }
 0x686   :  { %954 = vmax.xlane.f32.xlu0 %v953_v25 }
 0x688   :  { %v949_v26 = vpop.f32.mrb[12].mxu0 }
 0x689   :  { %v1704_v27 = vpop.f32.mrb[13].mxu0  ;;  %v956_v28 = vsel %vm139_vm2, %v949_v26, -inf }
 0x68a   :  { %957 = vmax.xlane.f32.xlu1 %v956_v28 }
 0x69b   :  { %975 = vrot.lane.b32.xlu1 %v2021_v8, %s1925_s12 }
 0x69c   :  { %1051 = vrot.lane.b32.xlu0 %v2024_v12, %s1925_s12 }
 0x69f   :  { %1129 = vrot.lane.b32.xlu1 %v2021_v8, %s1926_s13 }
 0x6a3   :  { %1207 = vrot.lane.b32.xlu1 %v2024_v12, %s1926_s13 }
 0x6a7   :  { %1205 = vrot.lane.b32.xlu1 %v2038_v16, %s1927_s14 }
 0x713   :  { %v955_v29 = vpop.xlane.xlu0 %954 }
 0x714   :  { %v959_v30 = vsub.f32 %v871_v21, %v955_v29 }
 0x716   :  { %v961_v31 = vmul.f32 1.442695, %v959_v30 }
 0x717   :  { %v1052_v32 = vpop.permute.xlu0 %1051  ;;  %v958_v33 = vpop.xlane.xlu1 %957 }
 0x718   :  { %1800 = vpow2.f32 %v961_v31  ;;  %v960_v34 = vsub.f32 %v949_v26, %v958_v33  ;;  %1711 = vmatpush3.msra.mxu0 %v1052_v32 }
 0x719   :  { %1720 = vmatprep.subr.mxu0 %v1917_v0 }
 0x71a   :  { %v963_v35 = vmul.f32 1.442695, %v960_v34 }
 0x71b   :  { %v976_v36 = vpop.permute.xlu1 %975 }
 0x71c   :  { %1802 = vpow2.f32 %v963_v35  ;;  %1706 = vmatpush3.msra.mxu1 %v976_v36 }
 0x71d   :  { %1715 = vmatprep.subr.mxu1 %v1917_v0 }
 0x71f   :  { %v1130_v42 = vpop.permute.xlu1 %1129 }
 0x722   :  { %v1801_v37 = vpop.eup %1800 }
 0x723   :  { %v965_v38 = vsel %vm139_vm2, %v1801_v37, 0.0  ;;  %v1208_v48 = vpop.permute.xlu1 %1207 }
 0x724   :  { %966 = vadd.xlane.f32.xlu0 %v965_v38 }
 0x726   :  { %v1803_v16 = vpop.eup %1802 }
 0x727   :  { %v968_v39 = vsel %vm139_vm2, %v1803_v16, 0.0  ;;  %v1206_v50 = vpop.permute.xlu1 %1205 }
 0x728   :  { %969 = vadd.xlane.f32.xlu0 %v968_v39 }
 0x73e   :  { %1127 = vrot.lane.b32.xlu0 %v2029_v14, %s1927_s14 }
 0x7b1   :  { %v967_v40 = vpop.xlane.xlu0 %966 }
 0x7b2   :  { %1804 = vrcp.f32 %v967_v40  ;;  %v1605_v40 = vld [vmem:[%s2186_s4] ss:$0 sm:$0xff] }
 0x7b5   :  { %v970_v41 = vpop.xlane.xlu0 %969 }
 0x7b6   :  { %1806 = vrcp.f32 %v970_v41 }
 0x7b9   :  { %v1128_v14 = vpop.permute.xlu0 %1127 }
 0x7bc   :  { %v1805_v43 = vpop.eup %1804 }
 0x7bd   :  { %v973_v44 = vmul.f32 %v1805_v43, %v1801_v37 }
 0x7bf   :  { %1708 = vmatmul.mubr.msk.f32.vlgmr.msra.gmra.mrb[10].mxu1 %vm139_vm2, %v973_v44 }
 0x7c0   :  { %v1807_v46 = vpop.eup %1806  ;;  %1716 = vmatpush3.xpose.msk.msra.mxu1 %vm139_vm2, %v1130_v42  ;;  %1717 = vmatprep.mubr.msk.f32.mxu1 %vm1918_vm0, %v1917_v0 }
 0x7c1   :  { %v974_v49 = vmul.f32 %v1807_v46, %v1803_v16  ;;  %1725 = vmatprep.subr.mxu1 %v1917_v0 }
 0x7c3   :  { %1713 = vmatmul.mubr.msk.f32.vlgmr.msra.gmra.mrb[14].mxu0 %vm139_vm2, %v974_v49  ;;  %1718 = vmatmul.mubr.msk.f32.vlgmr.msra.gmra.mrb[12].mxu1 %vm139_vm2, %v1128_v14 }
 0x7c4   :  { %1721 = vmatpush3.xpose.msk.msra.mxu0 %vm139_vm2, %v1208_v48  ;;  %1722 = vmatprep.mubr.msk.f32.mxu0 %vm1918_vm0, %v1917_v0 }
 0x7c5   :  { %1730 = vmatprep.subr.mxu0 %v1917_v0  ;;  %1727 = vmatprep.mubr.msk.f32.mxu1 %vm1918_vm0, %v1917_v0 }
 0x7c7   :  { %1723 = vmatmul.mubr.msk.f32.vlgmr.msra.gmra.mrb[16].mxu0 %vm139_vm2, %v1206_v50 }
 0x7c8   :  { %1732 = vmatprep.mubr.msk.f32.mxu0 %vm1918_vm0, %v1917_v0 }
 0x892   :  { %v1047_v51 = vpop.f32.mrb[10].mxu1 }
 0x893   :  { %v1709_v52 = vpop.f32.mrb[11].mxu1 }
 0x896   :  { %v1123_v53 = vpop.f32.mrb[14].mxu0  ;;  %v1201_v54 = vpop.f32.mrb[12].mxu1 }
 0x897   :  { %v1770_v55 = vpack.i.bf16 %v1123_v53, %v1047_v51  ;;  %v1714_v56 = vpop.f32.mrb[15].mxu0  ;;  %v1719_v57 = vpop.f32.mrb[13].mxu1  ;;  %v1283_v58 = vsel %vm139_vm2, %v1201_v54, -inf }
 0x898   :  { %1284 = vmax.xlane.f32.xlu0 %v1283_v58 }
 0x89a   :  { %v1279_v59 = vpop.f32.mrb[16].mxu0 }
 0x89b   :  { %v1724_v60 = vpop.f32.mrb[17].mxu0  ;;  %v1286_v61 = vsel %vm139_vm2, %v1279_v59, -inf }
 0x89c   :  { %1287 = vmax.xlane.f32.xlu1 %v1286_v61 }
 0x8ad   :  { %1305 = vrot.lane.b32.xlu1 %v2021_v8, %s1928_s15 }
 0x8b1   :  { %1766 = vrot.lane.b32.xlu1 %v1765_v22, %s1915_s17 }
 0x8b5   :  { %1771 = vrot.lane.b32.xlu1 %v1770_v55, %s1929_s16 }
 0x925   :  { %v1285_v62 = vpop.xlane.xlu0 %1284 }
 0x926   :  { %v1289_v63 = vsub.f32 %v1201_v54, %v1285_v62 }
 0x928   :  { %v1291_v1 = vmul.f32 1.442695, %v1289_v63 }
 0x929   :  { %v1288_v2 = vpop.xlane.xlu1 %1287 }
 0x92a   :  { %1808 = vpow2.f32 %v1291_v1  ;;  %v1290_v3 = vsub.f32 %v1279_v59, %v1288_v2 }
 0x92c   :  { %v1293_v4 = vmul.f32 1.442695, %v1290_v3 }
 0x92d   :  { %v1306_v5 = vpop.permute.xlu1 %1305 }
 0x92e   :  { %1810 = vpow2.f32 %v1293_v4  ;;  %1726 = vmatpush3.msra.mxu1 %v1306_v5 }
 0x92f   :  { %1735 = vmatprep.subr.bf16.mxu1 %v1917_v0 }
 0x931   :  { %v1767_v26 = vpop.permute.xlu1 %1766 }
 0x932   :  { %v1769_v28 = vunpack.i.h.bf16 %v1767_v26  ;;  %v1768_v29 = vunpack.i.l.bf16 %v1767_v26 }
 0x934   :  { %v1809_v8 = vpop.eup %1808  ;;  %v1481_v33 = vsel %vm139_vm2, %v2075_v45, %v1768_v29 }
 0x935   :  { %v1295_v6 = vsel %vm139_vm2, %v1809_v8, 0.0  ;;  %v1772_v27 = vpop.permute.xlu1 %1771 }
 0x936   :  { %1296 = vadd.xlane.f32.xlu0 %v1295_v6  ;;  %v1774_v30 = vunpack.i.h.bf16 %v1772_v27  ;;  %v1773_v31 = vunpack.i.l.bf16 %v1772_v27 }
 0x938   :  { %v1811_v7 = vpop.eup %1810  ;;  %v1484_v36 = vsel %vm1483_vm3, %v1481_v33, %v1773_v31 }
 0x939   :  { %v1298_v9 = vsel %vm139_vm2, %v1811_v7, 0.0 }
 0x93a   :  { %1299 = vadd.xlane.f32.xlu0 %v1298_v9 }
 0x950   :  { %1381 = vrot.lane.b32.xlu0 %v2024_v12, %s1928_s15  ;;  %v1783_v12 = vld [vmem:[#allocation7 + $0x8] sm:$0xff]  }
 0x9c3   :  { %v1297_v10 = vpop.xlane.xlu0 %1296 }
 0x9c4   :  { %1812 = vrcp.f32 %v1297_v10 }
 0x9c7   :  { %v1300_v11 = vpop.xlane.xlu0 %1299 }
 0x9c8   :  { %1814 = vrcp.f32 %v1300_v11 }
 0x9cb   :  { %v1382_v13 = vpop.permute.xlu0 %1381 }
 0x9cc   :  { %1731 = vmatpush3.msra.mxu0 %v1382_v13 }
 0x9ce   :  { %v1813_v15 = vpop.eup %1812 }
 0x9cf   :  { %v1303_v17 = vmul.f32 %v1813_v15, %v1809_v8 }
 0x9d1   :  { %1728 = vmatmul.mubr.msk.f32.vlgmr.msra.gmra.mrb[14].mxu1 %vm139_vm2, %v1303_v17 }
 0x9d2   :  { %v1815_v18 = vpop.eup %1814  ;;  %1739 = vmatprep.mubr.msk.bf16.mxu1 %vm1918_vm0, %v1917_v0  ;;  %1736 = vmatpush3.bf16.msra.mxu1 %v1782_v20 }
 0x9d3   :  { %v1304_v19 = vmul.f32 %v1815_v18, %v1811_v7  ;;  %1737 = vmatprep.subr.bf16.mxu1 %v1917_v0  ;;  %v1482_v0 = vsel %vm139_vm2, %v2077_v47, %v1769_v28 }
 0x9d4   :  { %v1485_v37 = vsel %vm1483_vm3, %v1482_v0, %v1774_v30 }
 0x9d5   :  { %1733 = vmatmul.mubr.msk.f32.vlgmr.msra.gmra.mrb[18].mxu0 %vm139_vm2, %v1304_v19 }
 0x9d6   :  { %1738 = vmatpush3.bf16.msra.mxu1 %v1783_v12 }
 0xaa4   :  { %v1377_v21 = vpop.f32.mrb[14].mxu1 }
 0xaa5   :  { %v1729_v22 = vpop.f32.mrb[15].mxu1 }
 0xaa8   :  { %v1453_v23 = vpop.f32.mrb[18].mxu0 }
 0xaa9   :  { %v1775_v24 = vpack.i.bf16 %v1453_v23, %v1377_v21  ;;  %v1734_v25 = vpop.f32.mrb[19].mxu0 }
 0xaab   :  { %1776 = vrot.lane.b32.xlu0 %v1775_v24, %s1930_s18 }
 0xb1d   :  { %v1777_v32 = vpop.permute.xlu0 %1776 }
 0xb1e   :  { %v1779_v34 = vunpack.i.h.bf16 %v1777_v32  ;;  %v1778_v35 = vunpack.i.l.bf16 %v1777_v32 }
 0xb20   :  { %v1488_v38 = vsel %vm1486_vm4, %v1485_v37, %v1779_v34  ;;  %v1487_v16 = vsel %vm1486_vm4, %v1484_v36, %v1778_v35 }
 0xb21   :  { %v1489_v39 = vpack.c.bf16 %v1488_v38, %v1487_v16 }
 0xb23   :  { %1740 = vmatmul.mubr.msk.bf16.vlgmr.msra.gmra.mrb[16].mxu1 %vm89_vm1, %v1489_v39 }
 0xbf6   :  { %v1550_v41 = vpop.f32.mrb[16].mxu1 }
 0xbf7   :  { %v1551_v47 = vadd.f32 %v1605_v40, %v1550_v41  ;;  %v1741_v42 = vpop.f32.mrb[17].mxu1 }
 0xbf8   :  { %v1553_v43 = vpop.f32.mrb[18].mxu1 }
 0xbf9   :  { %1557 = vst.msk [vmem:[#allocation8] sm:$0xff] %vm89_vm1, %v1551_v47  ;;  %v1554_v45 = vadd.f32 %v1605_v40, %v1553_v43  ;;  %v1742_v44 = vpop.f32.mrb[19].mxu1 }
 0xbfb   :  { %1558 = vst.msk [vmem:[#allocation8 + $0x8] sm:$0xff] %vm89_vm1, %v1554_v45 }
 0xbfc   :  { %1893 = shalt.err (!%p1890_p0)
}
 0xbfd   :  { %s1894_s25 = scalar_lea.hbm %s2187_s5, 256 }
 0xbfe   :  { %p1895_p1 = scmp.ne.s32.totalorder %s2187_s5, %s1894_s25  ;;  %p1898_p2 = scmp.lt.u32.totalorder %s1894_s25, %s2187_s5 }
 0xc00   :  { %p1900_p3 = pnand %p1898_p2, %p1895_p1 }
 0xc02   :  { %1903 = shalt.err (!%p1900_p3)
}
 0xc03   :  { %1570 = dma.vmem_to_hbm [thread:$0]  %s1565_s22, 256, %s2187_s5, [#allocation4], %s1914_s1, %s1914_s1, %s1915_s17  }
 0xc04   :  { %1908 = dma.done.wait [#allocation4], 256  }
 0xc05   :  { %1909 = vsyncadd [#allocation4], 4294967040 }
 0xc06   :  { %1574 = vsyncpa [#allocation3], 1 }
 0xc07   :  { %1575 = vsyncpa [#allocation6], 1 }
 0xc08   :  { %1576 = vsyncpa [#allocation4], 1 }

</bundles_post_ra>
